<compile_context>
chip_gen: v7x
topology: tpu7x:2x2x1
jax: 0.10.0
libtpu: 0.0.40
codegen_flags: <defaults>
</compile_context>

<pallas_src>
import functools

import numpy as np
import jax
import jax.numpy as jnp
from jax import lax
from jax.experimental import pallas as pl
from jax.experimental.pallas import tpu as pltpu


# ---------------------------------------------------------------------------
# Fused Pallas kernel (single invocation, batch folded onto lanes)
# ---------------------------------------------------------------------------
def _adip_fused_kernel(xcol1_ref, xph_ref, mask_ref, w1_ref, b1_ref,
                       w2_ref, b2_ref, w3x_ref, w3o_ref, b3_ref, o_ref,
                       *, w_lo, neg_slope):
    # --- down conv (3x3, stride 2): ONE flattened-K MXU matmul (BN scale
    #     pre-folded into w1, only the bias add remains) ----------------------
    y1 = jnp.dot(w1_ref[...], xcol1_ref[...],
                 preferred_element_type=jnp.float32)           # (8, B*64)
    y1 = y1 + b1_ref[...]
    y1 = jnp.where(y1 >= 0.0, y1, neg_slope * y1)              # LeakyReLU

    # --- sub-pixel up conv: a 3x3 conv after nearest x2 upsample is 4 phase
    #     convs on the LOW-RES map.  Build the 9-tap low-res im2col of y1 with
    #     lane rolls (XLU) + precomputed 0/1 border masks (VPU). -------------
    nl = y1.shape[1]                                           # B*64 lanes
    masks = mask_ref[...]                                      # (9, B*64)
    pieces = []
    for a in (-1, 0, 1):
        for b in (-1, 0, 1):
            t = (a + 1) * 3 + (b + 1)
            d = a * w_lo + b
            v = y1 if d == 0 else pltpu.roll(y1, shift=(-d) % nl, axis=1)
            pieces.append(v * masks[t:t + 1, :])
    x2col = jnp.concatenate(pieces, axis=0)                    # (72, B*64), vregs only

    # all 4 phases x 4 out-channels of the up conv in ONE MXU push
    y2all = jnp.dot(w2_ref[...], x2col,
                    preferred_element_type=jnp.float32)        # (16, B*64)

    # skip half of the 1x1 head for all phases at once
    hx = jnp.dot(w3x_ref[...], xph_ref[...],
                 preferred_element_type=jnp.float32)           # (4, 4*B*64)

    # --- per phase: bias + LeakyReLU, 1x1 head (concat never materialized),
    #     channel softmax, 128-lane-aligned store ----------------------------
    cout2 = b2_ref.shape[0]
    n_phase = xph_ref.shape[1] // nl
    for ph in range(n_phase):
        y2 = y2all[ph * cout2:(ph + 1) * cout2, :] + b2_ref[...]
        y2 = jnp.where(y2 >= 0.0, y2, neg_slope * y2)
        h = (hx[:, ph * nl:(ph + 1) * nl]
             + jnp.dot(w3o_ref[...], y2, preferred_element_type=jnp.float32)
             + b3_ref[...])
        m = jnp.max(h, axis=0, keepdims=True)                  # XLU reduce
        e = jnp.exp(h - m)                                     # EUP
        s = jnp.sum(e, axis=0, keepdims=True)
        r = pl.reciprocal(s, approx=True)
        r = r * (2.0 - s * r)                                  # one Newton step
        o_ref[:, ph * nl:(ph + 1) * nl] = (e * r).astype(o_ref.dtype)


# ---------------------------------------------------------------------------
# Forward wrapper (host-side im2col / phase layout are tiny, pure plumbing)
# ---------------------------------------------------------------------------
def adip_forward(packed, x_nchw, *, neg_slope=0.1):
    B, C, H, W = x_nchw.shape
    k, pad, stride = 3, 1, 2
    H1 = (H + 2 * pad - k) // stride + 1          # 8
    W1 = (W + 2 * pad - k) // stride + 1          # 8
    P1 = H1 * W1                                  # 64 low-res pixels
    NL = B * P1                                   # lanes per phase block (128)
    ktaps = k * k
    cout1 = packed["w1"].shape[0]                 # 8
    cout2 = packed["b2"].shape[0]                 # 4
    cout3 = packed["b3"].shape[0]                 # 4
    n_phase = stride * stride                     # 4

    # one-time im2col of the (tiny) network input for the stride-2 down conv;
    # rows ordered tap-major: row = (dy*3+dx)*C + c ; lanes = b*P1 + p_lo
    xp = jnp.pad(x_nchw, ((0, 0), (0, 0), (pad, pad), (pad, pad)))
    taps = []
    for dy in range(k):
        for dx in range(k):
            taps.append(
                xp[:, :, dy:dy + stride * (H1 - 1) + 1:stride,
                         dx:dx + stride * (W1 - 1) + 1:stride].reshape(B, C, P1))
    xcol1 = jnp.concatenate(taps, axis=1)                          # (B, 9C, P1)
    xcol1 = jnp.transpose(xcol1, (1, 0, 2)).reshape(ktaps * C, NL)

    # input in phase-major pixel layout for the 1x1 head's skip half:
    # lane = ph*NL + b*P1 + py*W1 + px, with ph = ry*2+rx, (oy,ox)=(2py+ry,2px+rx)
    x_ph = x_nchw.reshape(B, C, H1, stride, W1, stride)
    x_ph = jnp.transpose(x_ph, (1, 3, 5, 0, 2, 4)).reshape(C, n_phase * NL)

    kernel = functools.partial(_adip_fused_kernel, w_lo=W1, neg_slope=neg_slope)

    flops = (2 * cout1 * (ktaps * C) * NL                        # down conv
             + 2 * (n_phase * cout2) * (ktaps * cout1) * NL      # phase up conv
             + 2 * cout3 * C * (n_phase * NL)                    # head skip half
             + n_phase * 2 * cout3 * cout2 * NL)                 # head up half
    bytes_accessed = 4 * (xcol1.size + x_ph.size + packed["tap_mask"].size
                          + packed["w1"].size + packed["b1"].size
                          + packed["w2"].size + packed["b2"].size
                          + packed["w3x"].size + packed["w3o"].size
                          + packed["b3"].size + cout3 * n_phase * NL)
    cost = pl.CostEstimate(flops=flops,
                           transcendentals=(cout3 + 1) * n_phase * NL,
                           bytes_accessed=bytes_accessed)

    out = pl.pallas_call(
        kernel,
        out_shape=jax.ShapeDtypeStruct((cout3, n_phase * NL), jnp.float32),
        grid=(1,),
        in_specs=[
            pl.BlockSpec((ktaps * C, NL), lambda i: (0, 0)),             # xcol1
            pl.BlockSpec((C, n_phase * NL), lambda i: (0, 0)),           # x (phase-major)
            pl.BlockSpec((ktaps, NL), lambda i: (0, 0)),                 # tap border masks
            pl.BlockSpec((cout1, ktaps * C), lambda i: (0, 0)),          # w1 (scale folded)
            pl.BlockSpec((cout1, 1), lambda i: (0, 0)),                  # b1
            pl.BlockSpec((n_phase * cout2, ktaps * cout1), lambda i: (0, 0)),  # w2 phase weights
            pl.BlockSpec((cout2, 1), lambda i: (0, 0)),                  # b2
            pl.BlockSpec((cout3, C), lambda i: (0, 0)),                  # w3 (skip half)
            pl.BlockSpec((cout3, cout2), lambda i: (0, 0)),              # w3 (up half)
            pl.BlockSpec((cout3, 1), lambda i: (0, 0)),                  # b3
        ],
        out_specs=pl.BlockSpec((cout3, n_phase * NL), lambda i: (0, 0)),
        compiler_params=pltpu.CompilerParams(
            dimension_semantics=("arbitrary",)),
        cost_estimate=cost,
    )(xcol1, x_ph, packed["tap_mask"], packed["w1"], packed["b1"],
      packed["w2"], packed["b2"], packed["w3x"], packed["w3o"], packed["b3"])

    # depth-to-space (phase-major -> NCHW): pure XLA layout plumbing
    o = out.reshape(cout3, stride, stride, B, H1, W1)
    o = jnp.transpose(o, (3, 0, 4, 1, 5, 2)).reshape(B, cout3, H, W)
    return o


# ---------------------------------------------------------------------------
# Deterministic synthetic parameters (Conv bias + eval-mode BN folded to affine)
# ---------------------------------------------------------------------------
def init_params(key):
    eps = 1e-5

    def conv_bn(k, cin, cout, ksz):
        k1, k2, k3, k4, k5, k6 = jax.random.split(k, 6)
        fan_in = cin * ksz * ksz
        w = jax.random.normal(k1, (ksz, ksz, cin, cout), jnp.float32) \
            * (1.0 / jnp.sqrt(jnp.float32(fan_in)))
        b = 0.05 * jax.random.normal(k2, (cout,), jnp.float32)
        gamma = 1.0 + 0.1 * jax.random.normal(k3, (cout,), jnp.float32)
        beta = 0.05 * jax.random.normal(k4, (cout,), jnp.float32)
        mean = 0.05 * jax.random.normal(k5, (cout,), jnp.float32)
        var = 1.0 + 0.1 * jax.random.uniform(k6, (cout,), jnp.float32)
        scale = gamma / jnp.sqrt(var + eps)
        bias = beta + scale * (b - mean)
        return dict(w=w, scale=scale, bias=bias)

    kd, ku, ko = jax.random.split(key, 3)
    down = conv_bn(kd, 4, 8, 3)     # Conv2d(4 -> 8, k=3, s=2, p=1) + BN
    up = conv_bn(ku, 8, 4, 3)       # Conv2d(8 -> 4, k=3, s=1, p=1) + BN
    out = conv_bn(ko, 8, 4, 1)      # Conv2d(8 -> 4, k=1)           + BN
    out["w"] = out["w"].reshape(8, 4)
    return dict(down=down, up=up, out=out)


def pack_params(params, hw=(16, 16), batch=2):
    """Repack weights into the kernel layout.

    * BN scales are folded into the conv weights (only bias adds in-kernel).
    * The up conv (3x3 after nearest x2 upsample) is re-expressed as 4
      sub-pixel phase convs on the low-res map: effective low-res tap
      a = (ry+dy-1)//2, b = (rx+dx-1)//2 (floor division).
    """
    w1 = np.asarray(params["down"]["w"])      # (3,3,4,8) HWIO
    s1 = np.asarray(params["down"]["scale"])
    w2 = np.asarray(params["up"]["w"])        # (3,3,8,4) HWIO
    s2 = np.asarray(params["up"]["scale"])
    w3 = np.asarray(params["out"]["w"])       # (8,4)
    s3 = np.asarray(params["out"]["scale"])
    cin = w1.shape[2]
    cout1, cout2, cout3 = w1.shape[-1], w2.shape[-1], w3.shape[-1]
    h_lo, w_lo = hw[0] // 2, hw[1] // 2

    # down conv: rows=cout, cols=(dy*3+dx)*cin + c (matches xcol1 row order)
    w1m = (np.transpose(w1, (3, 0, 1, 2)).reshape(cout1, -1)
           * s1[:, None]).astype(np.float32)

    # up conv as 4 phase convs: rows = ph*cout2 + co, cols = tap*cout1 + cin
    w2eff = np.zeros((2, 2, cout2, 3, 3, cout1), np.float32)
    for ry in range(2):
        for rx in range(2):
            for dy in range(3):
                a = (ry + dy - 1) // 2
                for dx in range(3):
                    b = (rx + dx - 1) // 2
                    w2eff[ry, rx, :, a + 1, b + 1, :] += w2[dy, dx, :, :].T
    w2m = (w2eff.reshape(4 * cout2, 9 * cout1)
           * np.tile(s2, 4)[:, None]).astype(np.float32)

    # 1x1 head on concat([x, up]): split into skip / up halves, scale folded
    w3t = (w3.T * s3[:, None]).astype(np.float32)     # (cout3, 2*cin)

    # 0/1 border masks for the 9 low-res taps (periodic over the batch fold)
    m = np.zeros((9, h_lo * w_lo), np.float32)
    for a in (-1, 0, 1):
        for b in (-1, 0, 1):
            t = (a + 1) * 3 + (b + 1)
            for py in range(h_lo):
                for px in range(w_lo):
                    if 0 <= py + a < h_lo and 0 <= px + b < w_lo:
                        m[t, py * w_lo + px] = 1.0
    tap_mask = np.tile(m, (1, batch))

    return dict(
        w1=jnp.asarray(w1m),
        b1=jnp.asarray(np.asarray(params["down"]["bias"], np.float32).reshape(cout1, 1)),
        w2=jnp.asarray(w2m),
        b2=jnp.asarray(np.asarray(params["up"]["bias"], np.float32).reshape(cout2, 1)),
        w3x=jnp.asarray(w3t[:, :cin]),
        w3o=jnp.asarray(w3t[:, cin:]),
        b3=jnp.asarray(np.asarray(params["out"]["bias"], np.float32).reshape(cout3, 1)),
        tap_mask=jnp.asarray(tap_mask),
    )


# ---------------------------------------------------------------------------
# Pure-JAX reference for validation
# ---------------------------------------------------------------------------
def reference_forward(params, x_nchw):
    def conv(xh, w, stride, pad):
        return lax.conv_general_dilated(
            xh, w, window_strides=(stride, stride),
            padding=[(pad, pad), (pad, pad)],
            dimension_numbers=("NHWC", "HWIO", "NHWC"))

    x = jnp.transpose(x_nchw, (0, 2, 3, 1))
    o = conv(x, params["down"]["w"], 2, 1) * params["down"]["scale"] \
        + params["down"]["bias"]
    o = jnp.where(o >= 0, o, 0.1 * o)
    o = jnp.repeat(jnp.repeat(o, 2, axis=1), 2, axis=2)
    o = conv(o, params["up"]["w"], 1, 1) * params["up"]["scale"] \
        + params["up"]["bias"]
    o = jnp.where(o >= 0, o, 0.1 * o)
    cat = jnp.concatenate([x, o], axis=-1)
    y = jnp.einsum("bhwc,cf->bhwf", cat, params["out"]["w"])
    y = y * params["out"]["scale"] + params["out"]["bias"]
    y = jax.nn.softmax(y, axis=-1)
    return jnp.transpose(y, (0, 3, 1, 2))


if __name__ == "__main__":
    key = jax.random.PRNGKey(0)
    kx, kp = jax.random.split(key)
    B, C, H, W = 2, 4, 16, 16
    x = jax.random.normal(kx, (B, C, H, W), jnp.float32)
    params = init_params(kp)
    packed = pack_params(params, hw=(H, W), batch=B)

    fwd = jax.jit(adip_forward)
    y = jax.block_until_ready(fwd(packed, x))

    y_ref = reference_forward(params, x)
    assert y.shape == (B, 4, H, W), y.shape
    err = float(jnp.max(jnp.abs(y - y_ref)))
    assert jnp.allclose(y, y_ref, atol=1e-3, rtol=1e-3), err
    # softmax over channel dim must sum to 1
    assert jnp.allclose(jnp.sum(y, axis=1), 1.0, atol=1e-3)
    print("KERNEL_OK")
</pallas_src>

<mosaic_0001>
module attributes {stable_mosaic.version = 11 : i64} {
  func.func @_adip_fused_kernel(%arg0: i32, %arg1: memref<36x128xf32, #tpu.memory_space<vmem>>, %arg2: memref<4x512xf32, #tpu.memory_space<vmem>>, %arg3: memref<9x128xf32, #tpu.memory_space<vmem>>, %arg4: memref<8x36xf32, #tpu.memory_space<vmem>>, %arg5: memref<8x1xf32, #tpu.memory_space<vmem>>, %arg6: memref<16x72xf32, #tpu.memory_space<vmem>>, %arg7: memref<4x1xf32, #tpu.memory_space<vmem>>, %arg8: memref<4x4xf32, #tpu.memory_space<vmem>>, %arg9: memref<4x4xf32, #tpu.memory_space<vmem>>, %arg10: memref<4x1xf32, #tpu.memory_space<vmem>>, %arg11: memref<4x512xf32, #tpu.memory_space<vmem>>) attributes {dimension_semantics = [#tpu.dimension_semantics<arbitrary>], iteration_bounds = array<i64: 1>, scalar_prefetch = 0 : i64, scratch_operands = 0 : i64, tpu.core_type = #tpu.core_type<tc>, window_params = [{pipeline_mode = #tpu.pipeline_mode<synchronous>, transform_indices = @transform_0, window_bounds = array<i64: 36, 128>}, {pipeline_mode = #tpu.pipeline_mode<synchronous>, transform_indices = @transform_1, window_bounds = array<i64: 4, 512>}, {pipeline_mode = #tpu.pipeline_mode<synchronous>, transform_indices = @transform_2, window_bounds = array<i64: 9, 128>}, {pipeline_mode = #tpu.pipeline_mode<synchronous>, transform_indices = @transform_3, window_bounds = array<i64: 8, 36>}, {pipeline_mode = #tpu.pipeline_mode<synchronous>, transform_indices = @transform_4, window_bounds = array<i64: 8, 1>}, {pipeline_mode = #tpu.pipeline_mode<synchronous>, transform_indices = @transform_5, window_bounds = array<i64: 16, 72>}, {pipeline_mode = #tpu.pipeline_mode<synchronous>, transform_indices = @transform_6, window_bounds = array<i64: 4, 1>}, {pipeline_mode = #tpu.pipeline_mode<synchronous>, transform_indices = @transform_7, window_bounds = array<i64: 4, 4>}, {pipeline_mode = #tpu.pipeline_mode<synchronous>, transform_indices = @transform_8, window_bounds = array<i64: 4, 4>}, {pipeline_mode = #tpu.pipeline_mode<synchronous>, transform_indices = @transform_9, window_bounds = array<i64: 4, 1>}, {pipeline_mode = #tpu.pipeline_mode<synchronous>, transform_indices = @transform_10, window_bounds = array<i64: 4, 512>}]} {
    %c0 = arith.constant 0 : index
    %c0_0 = arith.constant 0 : index
    %0 = vector.load %arg4[%c0, %c0_0] : memref<8x36xf32, #tpu.memory_space<vmem>>, vector<8x36xf32>
    %c0_1 = arith.constant 0 : index
    %c0_2 = arith.constant 0 : index
    %1 = vector.load %arg1[%c0_1, %c0_2] : memref<36x128xf32, #tpu.memory_space<vmem>>, vector<36x128xf32>
    %cst = arith.constant dense<0.000000e+00> : vector<8x128xf32>
    %2 = tpu.matmul %0, %1, %cst {dimension_numbers = #tpu.dot_dimension_numbers<[1], [0], [0], [1], [0, 0, 1, 1], [], []>} : vector<8x36xf32>, vector<36x128xf32>, vector<8x128xf32> -> vector<8x128xf32>
    %c0_3 = arith.constant 0 : index
    %c0_4 = arith.constant 0 : index
    %3 = vector.load %arg5[%c0_3, %c0_4] : memref<8x1xf32, #tpu.memory_space<vmem>>, vector<8x1xf32>
    %4 = vector.broadcast %3 : vector<8x1xf32> to vector<8x128xf32>
    %5 = arith.addf %2, %4 : vector<8x128xf32>
    %cst_5 = arith.constant 0.000000e+00 : f32
    %6 = vector.broadcast %cst_5 : f32 to vector<8x128xf32>
    %7 = arith.cmpf oge, %5, %6 : vector<8x128xf32>
    %cst_6 = arith.constant 1.000000e-01 : f32
    %8 = vector.broadcast %cst_6 : f32 to vector<8x128xf32>
    %9 = arith.mulf %8, %5 : vector<8x128xf32>
    %10 = arith.select %7, %5, %9 : vector<8x128xi1>, vector<8x128xf32>
    %c0_7 = arith.constant 0 : index
    %c0_8 = arith.constant 0 : index
    %11 = vector.load %arg3[%c0_7, %c0_8] : memref<9x128xf32, #tpu.memory_space<vmem>>, vector<9x128xf32>
    %c9_i32 = arith.constant 9 : i32
    %12 = tpu.dynamic_rotate %10 by %c9_i32 dim 1 : vector<8x128xf32>, i32 -> vector<8x128xf32>
    %13 = vector.extract_strided_slice %11 {offsets = [0, 0], sizes = [1, 128], strides = [1, 1]} : vector<9x128xf32> to vector<1x128xf32>
    %14 = vector.broadcast %13 : vector<1x128xf32> to vector<8x128xf32>
    %15 = arith.mulf %12, %14 : vector<8x128xf32>
    %c8_i32 = arith.constant 8 : i32
    %16 = tpu.dynamic_rotate %10 by %c8_i32 dim 1 : vector<8x128xf32>, i32 -> vector<8x128xf32>
    %17 = vector.extract_strided_slice %11 {offsets = [1, 0], sizes = [1, 128], strides = [1, 1]} : vector<9x128xf32> to vector<1x128xf32>
    %18 = vector.broadcast %17 : vector<1x128xf32> to vector<8x128xf32>
    %19 = arith.mulf %16, %18 : vector<8x128xf32>
    %c7_i32 = arith.constant 7 : i32
    %20 = tpu.dynamic_rotate %10 by %c7_i32 dim 1 : vector<8x128xf32>, i32 -> vector<8x128xf32>
    %21 = vector.extract_strided_slice %11 {offsets = [2, 0], sizes = [1, 128], strides = [1, 1]} : vector<9x128xf32> to vector<1x128xf32>
    %22 = vector.broadcast %21 : vector<1x128xf32> to vector<8x128xf32>
    %23 = arith.mulf %20, %22 : vector<8x128xf32>
    %c1_i32 = arith.constant 1 : i32
    %24 = tpu.dynamic_rotate %10 by %c1_i32 dim 1 : vector<8x128xf32>, i32 -> vector<8x128xf32>
    %25 = vector.extract_strided_slice %11 {offsets = [3, 0], sizes = [1, 128], strides = [1, 1]} : vector<9x128xf32> to vector<1x128xf32>
    %26 = vector.broadcast %25 : vector<1x128xf32> to vector<8x128xf32>
    %27 = arith.mulf %24, %26 : vector<8x128xf32>
    %28 = vector.extract_strided_slice %11 {offsets = [4, 0], sizes = [1, 128], strides = [1, 1]} : vector<9x128xf32> to vector<1x128xf32>
    %29 = vector.broadcast %28 : vector<1x128xf32> to vector<8x128xf32>
    %30 = arith.mulf %10, %29 : vector<8x128xf32>
    %c127_i32 = arith.constant 127 : i32
    %31 = tpu.dynamic_rotate %10 by %c127_i32 dim 1 : vector<8x128xf32>, i32 -> vector<8x128xf32>
    %32 = vector.extract_strided_slice %11 {offsets = [5, 0], sizes = [1, 128], strides = [1, 1]} : vector<9x128xf32> to vector<1x128xf32>
    %33 = vector.broadcast %32 : vector<1x128xf32> to vector<8x128xf32>
    %34 = arith.mulf %31, %33 : vector<8x128xf32>
    %c121_i32 = arith.constant 121 : i32
    %35 = tpu.dynamic_rotate %10 by %c121_i32 dim 1 : vector<8x128xf32>, i32 -> vector<8x128xf32>
    %36 = vector.extract_strided_slice %11 {offsets = [6, 0], sizes = [1, 128], strides = [1, 1]} : vector<9x128xf32> to vector<1x128xf32>
    %37 = vector.broadcast %36 : vector<1x128xf32> to vector<8x128xf32>
    %38 = arith.mulf %35, %37 : vector<8x128xf32>
    %c120_i32 = arith.constant 120 : i32
    %39 = tpu.dynamic_rotate %10 by %c120_i32 dim 1 : vector<8x128xf32>, i32 -> vector<8x128xf32>
    %40 = vector.extract_strided_slice %11 {offsets = [7, 0], sizes = [1, 128], strides = [1, 1]} : vector<9x128xf32> to vector<1x128xf32>
    %41 = vector.broadcast %40 : vector<1x128xf32> to vector<8x128xf32>
    %42 = arith.mulf %39, %41 : vector<8x128xf32>
    %c119_i32 = arith.constant 119 : i32
    %43 = tpu.dynamic_rotate %10 by %c119_i32 dim 1 : vector<8x128xf32>, i32 -> vector<8x128xf32>
    %44 = vector.extract_strided_slice %11 {offsets = [8, 0], sizes = [1, 128], strides = [1, 1]} : vector<9x128xf32> to vector<1x128xf32>
    %45 = vector.broadcast %44 : vector<1x128xf32> to vector<8x128xf32>
    %46 = arith.mulf %43, %45 : vector<8x128xf32>
    %47 = tpu.concatenate %15, %19, %23, %27, %30, %34, %38, %42, %46 in 0 : vector<8x128xf32>, vector<8x128xf32>, vector<8x128xf32>, vector<8x128xf32>, vector<8x128xf32>, vector<8x128xf32>, vector<8x128xf32>, vector<8x128xf32>, vector<8x128xf32> -> vector<72x128xf32>
    %c0_9 = arith.constant 0 : index
    %c0_10 = arith.constant 0 : index
    %48 = vector.load %arg6[%c0_9, %c0_10] : memref<16x72xf32, #tpu.memory_space<vmem>>, vector<16x72xf32>
    %cst_11 = arith.constant dense<0.000000e+00> : vector<16x128xf32>
    %49 = tpu.matmul %48, %47, %cst_11 {dimension_numbers = #tpu.dot_dimension_numbers<[1], [0], [0], [1], [0, 0, 1, 1], [], []>} : vector<16x72xf32>, vector<72x128xf32>, vector<16x128xf32> -> vector<16x128xf32>
    %c0_12 = arith.constant 0 : index
    %c0_13 = arith.constant 0 : index
    %50 = vector.load %arg8[%c0_12, %c0_13] : memref<4x4xf32, #tpu.memory_space<vmem>>, vector<4x4xf32>
    %c0_14 = arith.constant 0 : index
    %c0_15 = arith.constant 0 : index
    %51 = vector.load %arg2[%c0_14, %c0_15] : memref<4x512xf32, #tpu.memory_space<vmem>>, vector<4x512xf32>
    %cst_16 = arith.constant dense<0.000000e+00> : vector<4x512xf32>
    %52 = tpu.matmul %50, %51, %cst_16 {dimension_numbers = #tpu.dot_dimension_numbers<[1], [0], [0], [1], [0, 0, 1, 1], [], []>} : vector<4x4xf32>, vector<4x512xf32>, vector<4x512xf32> -> vector<4x512xf32>
    %53 = vector.extract_strided_slice %49 {offsets = [0, 0], sizes = [4, 128], strides = [1, 1]} : vector<16x128xf32> to vector<4x128xf32>
    %c0_17 = arith.constant 0 : index
    %c0_18 = arith.constant 0 : index
    %54 = vector.load %arg7[%c0_17, %c0_18] : memref<4x1xf32, #tpu.memory_space<vmem>>, vector<4x1xf32>
    %55 = vector.broadcast %54 : vector<4x1xf32> to vector<4x128xf32>
    %56 = arith.addf %53, %55 : vector<4x128xf32>
    %cst_19 = arith.constant 0.000000e+00 : f32
    %57 = vector.broadcast %cst_19 : f32 to vector<4x128xf32>
    %58 = arith.cmpf oge, %56, %57 : vector<4x128xf32>
    %cst_20 = arith.constant 1.000000e-01 : f32
    %59 = vector.broadcast %cst_20 : f32 to vector<4x128xf32>
    %60 = arith.mulf %59, %56 : vector<4x128xf32>
    %61 = arith.select %58, %56, %60 : vector<4x128xi1>, vector<4x128xf32>
    %62 = vector.extract_strided_slice %52 {offsets = [0, 0], sizes = [4, 128], strides = [1, 1]} : vector<4x512xf32> to vector<4x128xf32>
    %c0_21 = arith.constant 0 : index
    %c0_22 = arith.constant 0 : index
    %63 = vector.load %arg9[%c0_21, %c0_22] : memref<4x4xf32, #tpu.memory_space<vmem>>, vector<4x4xf32>
    %cst_23 = arith.constant dense<0.000000e+00> : vector<4x128xf32>
    %64 = tpu.matmul %63, %61, %cst_23 {dimension_numbers = #tpu.dot_dimension_numbers<[1], [0], [0], [1], [0, 0, 1, 1], [], []>} : vector<4x4xf32>, vector<4x128xf32>, vector<4x128xf32> -> vector<4x128xf32>
    %65 = arith.addf %62, %64 : vector<4x128xf32>
    %c0_24 = arith.constant 0 : index
    %c0_25 = arith.constant 0 : index
    %66 = vector.load %arg10[%c0_24, %c0_25] : memref<4x1xf32, #tpu.memory_space<vmem>>, vector<4x1xf32>
    %67 = vector.broadcast %66 : vector<4x1xf32> to vector<4x128xf32>
    %68 = arith.addf %65, %67 : vector<4x128xf32>
    %cst_26 = arith.constant dense<0xFF800000> : vector<128xf32>
    %69 = vector.multi_reduction <maximumf>, %68, %cst_26 [0] : vector<4x128xf32> to vector<128xf32>
    %70 = vector.shape_cast %69 : vector<128xf32> to vector<1x128xf32>
    %71 = vector.broadcast %70 : vector<1x128xf32> to vector<4x128xf32>
    %72 = arith.subf %68, %71 : vector<4x128xf32>
    %73 = math.exp %72 : vector<4x128xf32>
    %cst_27 = arith.constant dense<0.000000e+00> : vector<128xf32>
    %74 = vector.multi_reduction <add>, %73, %cst_27 [0] : vector<4x128xf32> to vector<128xf32>
    %75 = vector.shape_cast %74 : vector<128xf32> to vector<1x128xf32>
    %76 = tpu.reciprocal %75 {approx = true} : vector<1x128xf32> -> vector<1x128xf32>
    %77 = arith.mulf %75, %76 : vector<1x128xf32>
    %cst_28 = arith.constant 2.000000e+00 : f32
    %78 = vector.broadcast %cst_28 : f32 to vector<1x128xf32>
    %79 = arith.subf %78, %77 : vector<1x128xf32>
    %80 = arith.mulf %76, %79 : vector<1x128xf32>
    %81 = vector.broadcast %80 : vector<1x128xf32> to vector<4x128xf32>
    %82 = arith.mulf %73, %81 : vector<4x128xf32>
    %c0_29 = arith.constant 0 : index
    %c0_30 = arith.constant 0 : index
    %83 = vector.load %arg11[%c0_29, %c0_30] : memref<4x512xf32, #tpu.memory_space<vmem>>, vector<4x128xf32>
    tpu.vector_store %arg11[%c0_29, %c0_30], %82 {strides = array<i32>} : memref<4x512xf32, #tpu.memory_space<vmem>>, vector<4x128xf32>,
    %84 = vector.extract_strided_slice %49 {offsets = [4, 0], sizes = [4, 128], strides = [1, 1]} : vector<16x128xf32> to vector<4x128xf32>
    %c0_31 = arith.constant 0 : index
    %c0_32 = arith.constant 0 : index
    %85 = vector.load %arg7[%c0_31, %c0_32] : memref<4x1xf32, #tpu.memory_space<vmem>>, vector<4x1xf32>
    %86 = vector.broadcast %85 : vector<4x1xf32> to vector<4x128xf32>
    %87 = arith.addf %84, %86 : vector<4x128xf32>
    %cst_33 = arith.constant 0.000000e+00 : f32
    %88 = vector.broadcast %cst_33 : f32 to vector<4x128xf32>
    %89 = arith.cmpf oge, %87, %88 : vector<4x128xf32>
    %cst_34 = arith.constant 1.000000e-01 : f32
    %90 = vector.broadcast %cst_34 : f32 to vector<4x128xf32>
    %91 = arith.mulf %90, %87 : vector<4x128xf32>
    %92 = arith.select %89, %87, %91 : vector<4x128xi1>, vector<4x128xf32>
    %93 = vector.extract_strided_slice %52 {offsets = [0, 128], sizes = [4, 128], strides = [1, 1]} : vector<4x512xf32> to vector<4x128xf32>
    %c0_35 = arith.constant 0 : index
    %c0_36 = arith.constant 0 : index
    %94 = vector.load %arg9[%c0_35, %c0_36] : memref<4x4xf32, #tpu.memory_space<vmem>>, vector<4x4xf32>
    %cst_37 = arith.constant dense<0.000000e+00> : vector<4x128xf32>
    %95 = tpu.matmul %94, %92, %cst_37 {dimension_numbers = #tpu.dot_dimension_numbers<[1], [0], [0], [1], [0, 0, 1, 1], [], []>} : vector<4x4xf32>, vector<4x128xf32>, vector<4x128xf32> -> vector<4x128xf32>
    %96 = arith.addf %93, %95 : vector<4x128xf32>
    %c0_38 = arith.constant 0 : index
    %c0_39 = arith.constant 0 : index
    %97 = vector.load %arg10[%c0_38, %c0_39] : memref<4x1xf32, #tpu.memory_space<vmem>>, vector<4x1xf32>
    %98 = vector.broadcast %97 : vector<4x1xf32> to vector<4x128xf32>
    %99 = arith.addf %96, %98 : vector<4x128xf32>
    %cst_40 = arith.constant dense<0xFF800000> : vector<128xf32>
    %100 = vector.multi_reduction <maximumf>, %99, %cst_40 [0] : vector<4x128xf32> to vector<128xf32>
    %101 = vector.shape_cast %100 : vector<128xf32> to vector<1x128xf32>
    %102 = vector.broadcast %101 : vector<1x128xf32> to vector<4x128xf32>
    %103 = arith.subf %99, %102 : vector<4x128xf32>
    %104 = math.exp %103 : vector<4x128xf32>
    %cst_41 = arith.constant dense<0.000000e+00> : vector<128xf32>
    %105 = vector.multi_reduction <add>, %104, %cst_41 [0] : vector<4x128xf32> to vector<128xf32>
    %106 = vector.shape_cast %105 : vector<128xf32> to vector<1x128xf32>
    %107 = tpu.reciprocal %106 {approx = true} : vector<1x128xf32> -> vector<1x128xf32>
    %108 = arith.mulf %106, %107 : vector<1x128xf32>
    %cst_42 = arith.constant 2.000000e+00 : f32
    %109 = vector.broadcast %cst_42 : f32 to vector<1x128xf32>
    %110 = arith.subf %109, %108 : vector<1x128xf32>
    %111 = arith.mulf %107, %110 : vector<1x128xf32>
    %112 = vector.broadcast %111 : vector<1x128xf32> to vector<4x128xf32>
    %113 = arith.mulf %104, %112 : vector<4x128xf32>
    %c0_43 = arith.constant 0 : index
    %c128 = arith.constant 128 : index
    %114 = vector.load %arg11[%c0_43, %c128] : memref<4x512xf32, #tpu.memory_space<vmem>>, vector<4x128xf32>
    tpu.vector_store %arg11[%c0_43, %c128], %113 {strides = array<i32>} : memref<4x512xf32, #tpu.memory_space<vmem>>, vector<4x128xf32>,
    %115 = vector.extract_strided_slice %49 {offsets = [8, 0], sizes = [4, 128], strides = [1, 1]} : vector<16x128xf32> to vector<4x128xf32>
    %c0_44 = arith.constant 0 : index
    %c0_45 = arith.constant 0 : index
    %116 = vector.load %arg7[%c0_44, %c0_45] : memref<4x1xf32, #tpu.memory_space<vmem>>, vector<4x1xf32>
    %117 = vector.broadcast %116 : vector<4x1xf32> to vector<4x128xf32>
    %118 = arith.addf %115, %117 : vector<4x128xf32>
    %cst_46 = arith.constant 0.000000e+00 : f32
    %119 = vector.broadcast %cst_46 : f32 to vector<4x128xf32>
    %120 = arith.cmpf oge, %118, %119 : vector<4x128xf32>
    %cst_47 = arith.constant 1.000000e-01 : f32
    %121 = vector.broadcast %cst_47 : f32 to vector<4x128xf32>
    %122 = arith.mulf %121, %118 : vector<4x128xf32>
    %123 = arith.select %120, %118, %122 : vector<4x128xi1>, vector<4x128xf32>
    %124 = vector.extract_strided_slice %52 {offsets = [0, 256], sizes = [4, 128], strides = [1, 1]} : vector<4x512xf32> to vector<4x128xf32>
    %c0_48 = arith.constant 0 : index
    %c0_49 = arith.constant 0 : index
    %125 = vector.load %arg9[%c0_48, %c0_49] : memref<4x4xf32, #tpu.memory_space<vmem>>, vector<4x4xf32>
    %cst_50 = arith.constant dense<0.000000e+00> : vector<4x128xf32>
    %126 = tpu.matmul %125, %123, %cst_50 {dimension_numbers = #tpu.dot_dimension_numbers<[1], [0], [0], [1], [0, 0, 1, 1], [], []>} : vector<4x4xf32>, vector<4x128xf32>, vector<4x128xf32> -> vector<4x128xf32>
    %127 = arith.addf %124, %126 : vector<4x128xf32>
    %c0_51 = arith.constant 0 : index
    %c0_52 = arith.constant 0 : index
    %128 = vector.load %arg10[%c0_51, %c0_52] : memref<4x1xf32, #tpu.memory_space<vmem>>, vector<4x1xf32>
    %129 = vector.broadcast %128 : vector<4x1xf32> to vector<4x128xf32>
    %130 = arith.addf %127, %129 : vector<4x128xf32>
    %cst_53 = arith.constant dense<0xFF800000> : vector<128xf32>
    %131 = vector.multi_reduction <maximumf>, %130, %cst_53 [0] : vector<4x128xf32> to vector<128xf32>
    %132 = vector.shape_cast %131 : vector<128xf32> to vector<1x128xf32>
    %133 = vector.broadcast %132 : vector<1x128xf32> to vector<4x128xf32>
    %134 = arith.subf %130, %133 : vector<4x128xf32>
    %135 = math.exp %134 : vector<4x128xf32>
    %cst_54 = arith.constant dense<0.000000e+00> : vector<128xf32>
    %136 = vector.multi_reduction <add>, %135, %cst_54 [0] : vector<4x128xf32> to vector<128xf32>
    %137 = vector.shape_cast %136 : vector<128xf32> to vector<1x128xf32>
    %138 = tpu.reciprocal %137 {approx = true} : vector<1x128xf32> -> vector<1x128xf32>
    %139 = arith.mulf %137, %138 : vector<1x128xf32>
    %cst_55 = arith.constant 2.000000e+00 : f32
    %140 = vector.broadcast %cst_55 : f32 to vector<1x128xf32>
    %141 = arith.subf %140, %139 : vector<1x128xf32>
    %142 = arith.mulf %138, %141 : vector<1x128xf32>
    %143 = vector.broadcast %142 : vector<1x128xf32> to vector<4x128xf32>
    %144 = arith.mulf %135, %143 : vector<4x128xf32>
    %c0_56 = arith.constant 0 : index
    %c256 = arith.constant 256 : index
    %145 = vector.load %arg11[%c0_56, %c256] : memref<4x512xf32, #tpu.memory_space<vmem>>, vector<4x128xf32>
    tpu.vector_store %arg11[%c0_56, %c256], %144 {strides = array<i32>} : memref<4x512xf32, #tpu.memory_space<vmem>>, vector<4x128xf32>,
    %146 = vector.extract_strided_slice %49 {offsets = [12, 0], sizes = [4, 128], strides = [1, 1]} : vector<16x128xf32> to vector<4x128xf32>
    %c0_57 = arith.constant 0 : index
    %c0_58 = arith.constant 0 : index
    %147 = vector.load %arg7[%c0_57, %c0_58] : memref<4x1xf32, #tpu.memory_space<vmem>>, vector<4x1xf32>
    %148 = vector.broadcast %147 : vector<4x1xf32> to vector<4x128xf32>
    %149 = arith.addf %146, %148 : vector<4x128xf32>
    %cst_59 = arith.constant 0.000000e+00 : f32
    %150 = vector.broadcast %cst_59 : f32 to vector<4x128xf32>
    %151 = arith.cmpf oge, %149, %150 : vector<4x128xf32>
    %cst_60 = arith.constant 1.000000e-01 : f32
    %152 = vector.broadcast %cst_60 : f32 to vector<4x128xf32>
    %153 = arith.mulf %152, %149 : vector<4x128xf32>
    %154 = arith.select %151, %149, %153 : vector<4x128xi1>, vector<4x128xf32>
    %155 = vector.extract_strided_slice %52 {offsets = [0, 384], sizes = [4, 128], strides = [1, 1]} : vector<4x512xf32> to vector<4x128xf32>
    %c0_61 = arith.constant 0 : index
    %c0_62 = arith.constant 0 : index
    %156 = vector.load %arg9[%c0_61, %c0_62] : memref<4x4xf32, #tpu.memory_space<vmem>>, vector<4x4xf32>
    %cst_63 = arith.constant dense<0.000000e+00> : vector<4x128xf32>
    %157 = tpu.matmul %156, %154, %cst_63 {dimension_numbers = #tpu.dot_dimension_numbers<[1], [0], [0], [1], [0, 0, 1, 1], [], []>} : vector<4x4xf32>, vector<4x128xf32>, vector<4x128xf32> -> vector<4x128xf32>
    %158 = arith.addf %155, %157 : vector<4x128xf32>
    %c0_64 = arith.constant 0 : index
    %c0_65 = arith.constant 0 : index
    %159 = vector.load %arg10[%c0_64, %c0_65] : memref<4x1xf32, #tpu.memory_space<vmem>>, vector<4x1xf32>
    %160 = vector.broadcast %159 : vector<4x1xf32> to vector<4x128xf32>
    %161 = arith.addf %158, %160 : vector<4x128xf32>
    %cst_66 = arith.constant dense<0xFF800000> : vector<128xf32>
    %162 = vector.multi_reduction <maximumf>, %161, %cst_66 [0] : vector<4x128xf32> to vector<128xf32>
    %163 = vector.shape_cast %162 : vector<128xf32> to vector<1x128xf32>
    %164 = vector.broadcast %163 : vector<1x128xf32> to vector<4x128xf32>
    %165 = arith.subf %161, %164 : vector<4x128xf32>
    %166 = math.exp %165 : vector<4x128xf32>
    %cst_67 = arith.constant dense<0.000000e+00> : vector<128xf32>
    %167 = vector.multi_reduction <add>, %166, %cst_67 [0] : vector<4x128xf32> to vector<128xf32>
    %168 = vector.shape_cast %167 : vector<128xf32> to vector<1x128xf32>
    %169 = tpu.reciprocal %168 {approx = true} : vector<1x128xf32> -> vector<1x128xf32>
    %170 = arith.mulf %168, %169 : vector<1x128xf32>
    %cst_68 = arith.constant 2.000000e+00 : f32
    %171 = vector.broadcast %cst_68 : f32 to vector<1x128xf32>
    %172 = arith.subf %171, %170 : vector<1x128xf32>
    %173 = arith.mulf %169, %172 : vector<1x128xf32>
    %174 = vector.broadcast %173 : vector<1x128xf32> to vector<4x128xf32>
    %175 = arith.mulf %166, %174 : vector<4x128xf32>
    %c0_69 = arith.constant 0 : index
    %c384 = arith.constant 384 : index
    %176 = vector.load %arg11[%c0_69, %c384] : memref<4x512xf32, #tpu.memory_space<vmem>>, vector<4x128xf32>
    tpu.vector_store %arg11[%c0_69, %c384], %175 {strides = array<i32>} : memref<4x512xf32, #tpu.memory_space<vmem>>, vector<4x128xf32>,
    return
  }
  func.func @transform_0(%arg0: i32) -> (i32, i32) {
    %c0_i32 = arith.constant 0 : i32
    %c0_i32_0 = arith.constant 0 : i32
    %c0_i32_1 = arith.constant 0 : i32
    return %c0_i32, %c0_i32_0 : i32, i32
  }
  func.func @transform_1(%arg0: i32) -> (i32, i32) {
    %c0_i32 = arith.constant 0 : i32
    %c0_i32_0 = arith.constant 0 : i32
    %c0_i32_1 = arith.constant 0 : i32
    return %c0_i32, %c0_i32_0 : i32, i32
  }
  func.func @transform_2(%arg0: i32) -> (i32, i32) {
    %c0_i32 = arith.constant 0 : i32
    %c0_i32_0 = arith.constant 0 : i32
    %c0_i32_1 = arith.constant 0 : i32
    return %c0_i32, %c0_i32_0 : i32, i32
  }
  func.func @transform_3(%arg0: i32) -> (i32, i32) {
    %c0_i32 = arith.constant 0 : i32
    %c0_i32_0 = arith.constant 0 : i32
    %c0_i32_1 = arith.constant 0 : i32
    return %c0_i32, %c0_i32_0 : i32, i32
  }
  func.func @transform_4(%arg0: i32) -> (i32, i32) {
    %c0_i32 = arith.constant 0 : i32
    %c0_i32_0 = arith.constant 0 : i32
    %c0_i32_1 = arith.constant 0 : i32
    return %c0_i32, %c0_i32_0 : i32, i32
  }
  func.func @transform_5(%arg0: i32) -> (i32, i32) {
    %c0_i32 = arith.constant 0 : i32
    %c0_i32_0 = arith.constant 0 : i32
    %c0_i32_1 = arith.constant 0 : i32
    return %c0_i32, %c0_i32_0 : i32, i32
  }
  func.func @transform_6(%arg0: i32) -> (i32, i32) {
    %c0_i32 = arith.constant 0 : i32
    %c0_i32_0 = arith.constant 0 : i32
    %c0_i32_1 = arith.constant 0 : i32
    return %c0_i32, %c0_i32_0 : i32, i32
  }
  func.func @transform_7(%arg0: i32) -> (i32, i32) {
    %c0_i32 = arith.constant 0 : i32
    %c0_i32_0 = arith.constant 0 : i32
    %c0_i32_1 = arith.constant 0 : i32
    return %c0_i32, %c0_i32_0 : i32, i32
  }
  func.func @transform_8(%arg0: i32) -> (i32, i32) {
    %c0_i32 = arith.constant 0 : i32
    %c0_i32_0 = arith.constant 0 : i32
    %c0_i32_1 = arith.constant 0 : i32
    return %c0_i32, %c0_i32_0 : i32, i32
  }
  func.func @transform_9(%arg0: i32) -> (i32, i32) {
    %c0_i32 = arith.constant 0 : i32
    %c0_i32_0 = arith.constant 0 : i32
    %c0_i32_1 = arith.constant 0 : i32
    return %c0_i32, %c0_i32_0 : i32, i32
  }
  func.func @transform_10(%arg0: i32) -> (i32, i32) {
    %c0_i32 = arith.constant 0 : i32
    %c0_i32_0 = arith.constant 0 : i32
    %c0_i32_1 = arith.constant 0 : i32
    return %c0_i32, %c0_i32_0 : i32, i32
  }
}

</mosaic_0001>

<bundles_post_ra>
// kernel: adip_forward.1
= control target key start
LH: loop header
LB: loop body
LE: loop exit
PB: predicated region body
PF: predicated region fallthrough
CT: control target
= control target key end

     0   :  { %v1068_v0 = vmov 0.0|0.0   ;;  %vm1069_vm0 = vmmov 0   ;;  %v1070_v4 = vmov 0.0   ;;  %v1071_v7 = vmov 0   ;;  %s1075_s27 = smov 1   ;;  %s1076_s30 = smov 127   ;;  %s1278_s0 = inlined_call_operand.vmem [shape: f32[36,128], index: 0, kind: input, shape index: {}]   ;;  %s1279_s4 = inlined_call_operand.vmem [shape: f32[8,1], index: 4, kind: input, shape index: {}]   ;;  %s1280_s3 = inlined_call_operand.vmem [shape: f32[8,36], index: 3, kind: input, shape index: {}]   ;;  %s1281_s5 = inlined_call_operand.vmem [shape: f32[16,72], index: 5, kind: input, shape index: {}]   ;;  %s1282_s6 = inlined_call_operand.vmem [shape: f32[4,1], index: 6, kind: input, shape index: {}]   ;;  %s1283_s9 = inlined_call_operand.vmem [shape: f32[4,1], index: 9, kind: input, shape index: {}]   ;;  %s1284_s1 = inlined_call_operand.vmem [shape: f32[4,512], index: 1, kind: input, shape index: {}]   ;;  %s1285_s2 = inlined_call_operand.vmem [shape: f32[9,128], index: 2, kind: input, shape index: {}]   ;;  %s1286_s7 = inlined_call_operand.vmem [shape: f32[4,4], index: 7, kind: input, shape index: {}]   ;;  %s1287_s8 = inlined_call_operand.vmem [shape: f32[4,4], index: 8, kind: input, shape index: {}]   ;;  %s1288_s10 = inlined_call_operand.vmem [shape: f32[4,512], index: 10, kind: output, shape index: {}]  }
   0x1   :  { %1014 = vmatprep.subr.bf16.mxu0 %v1068_v0  ;;  %v36_v1 = vld [vmem:[%s1278_s0] sm:$0xff]  ;;  %v37_v2 = vld [vmem:[%s1278_s0 + $0x8] sm:$0xff]  ;;  %v38_v3 = vld [vmem:[%s1278_s0 + $0x10] sm:$0xff]  ;;  %970 = vmatprep.mubr.msk.f32.mxu0 %vm1069_vm0, %v1070_v4  ;;  %vm51_vm1 = vcmask 1043456   ;;  %vm47_vm2 = vcmask 293888   ;;  %vm193_vm4 = vcmask 588800   ;;  %v132_v29 = vlaneseq }
   0x2   :  { %v1015_v5 = vpack.c.bf16 %v37_v2, %v36_v1  ;;  %v39_v6 = vld [vmem:[%s1278_s0 + $0x18] sm:$0xff]  ;;  %1048 = vset.pattern.permute.xlu0 %v1071_v7  ;;  %1049 = vset.pattern.permute.xlu1 %v1071_v7  ;;  %v41_v8 = vld [vmem:[%s1279_s4] sm:$0xff]  ;;  %s1073_s4 = smov 9   ;;  %s1077_s11 = smov 121   ;;  %v918_v2 = vld [vmem:[%s1285_s2 + $0x8] ss:$0 sm:$0xff] }
   0x3   :  { %v1018_v9 = vpack.c.bf16 %v39_v6, %v38_v3  ;;  %44 = vperm.xlu0 %1048, %v41_v8   ;;  %v40_v10 = vld [vmem:[%s1278_s0 + $0x20] sm:$0xf]  ;;  %s1072_s0 = smov 8   ;;  %s1078_s12 = smov 120   ;;  %v133_v30 = vshrl.u32 %v132_v29, 7  ;;  %v192_v7 = vld [vmem:[%s1281_s5 + $0x8] sm:$0xff] }
   0x4   :  { %1016 = vmatpush3.bf16.msra.mxu0 %v1015_v5  ;;  %v35_v11 = vld [vmem:[%s1280_s3] sm:$0xff]  ;;  %s1074_s3 = smov 7   ;;  %s1079_s13 = smov 119   ;;  %vm282_vm5 = vcmask 31744  }
   0x5   :  { %1017 = vmatprep.subr.bf16.mxu0 %v1068_v0  ;;  %v191_v18 = vld [vmem:[%s1281_s5] sm:$0xff]  ;;  %v141_v31 = vsub.s32 1, %v133_v30  ;;  %v134_v32 = vsub.s32 0, %v133_v30  ;;  %v148_v34 = vsub.s32 2, %v133_v30  ;;  %v155_v37 = vsub.s32 3, %v133_v30 }
   0x6   :  { %991 = vmatprep.mubr.msk.f32.mxu1 %vm193_vm4, %v191_v18  ;;  %v436_v19 = vld [vmem:[%s1282_s6] sm:$0xf]  ;;  %v160_v41 = vsub.s32 4, %v133_v30  ;;  %v167_v45 = vsub.s32 5, %v133_v30  ;;  %v174_v50 = vsub.s32 6, %v133_v30  ;;  %v181_v54 = vsub.s32 7, %v133_v30 }
   0x7   :  { %v674_v20 = vld [vmem:[%s1282_s6] sm:$0xf] }
   0x8   :  { %1019 = vmatpush3.bf16.msra.mxu0 %v1018_v9  ;;  %v644_v21 = vld [vmem:[%s1283_s9] sm:$0xf]  ;;  %v277_v9 = vld [vmem:[%s1284_s1 + $0x8] sm:$0xff] }
   0x9   :  { %968 = vmatprep.subr.mxu0 %v1070_v4  ;;  %v882_v22 = vld [vmem:[%s1283_s9] sm:$0xf] }
   0xa   :  { %v554_v23 = vld [vmem:[%s1282_s6] sm:$0xf] }
   0xb   :  { %v792_v24 = vld [vmem:[%s1282_s6] sm:$0xf] }
   0xc   :  { %969 = vmatpush3.msk.msra.mxu0 %vm51_vm1, %v40_v10  ;;  %v524_v25 = vld [vmem:[%s1283_s9] sm:$0xf]  ;;  %v281_v10 = vcombine.high %v277_v9, %v277_v9 }
   0xd   :  { %971 = vmatmul.mubr.msk.f32.vlgmr.msra.gmra.mrb[0].mxu0 %vm47_vm2, %v35_v11  ;;  %v276_v26 = vld [vmem:[%s1284_s1] sm:$0xff] }
   0xe   :  { %358 = vmatprep.mubr.f32.mxu0 %v1070_v4  ;;  %v762_v27 = vld [vmem:[%s1283_s9] sm:$0xf]  ;;  %v280_v28 = vcombine.high %v276_v26, %v276_v26 }
   0xf   :  { %v128_v33 = vld [vmem:[%s1285_s2] sm:$0xff] }
  0x10   :  { %921 = vmatprep.subr.msk.mxu0 %vm51_vm1, %v280_v28  ;;  %v142_v35 = vrot.slane %v128_v33, %v141_v31  ;;  %v135_v36 = vrot.slane %v128_v33, %v134_v32  ;;  %v149_v40 = vrot.slane %v128_v33, %v148_v34  ;;  %v156_v44 = vrot.slane %v128_v33, %v155_v37  ;;  %v275_v8 = vld [vmem:[%s1286_s7] sm:$0xf] }
  0x11   :  { %922 = vmatpush1.msk.msra.mxu0 %vm51_vm1, %v276_v26  ;;  %v161_v49 = vrot.slane %v128_v33, %v160_v41  ;;  %v168_v53 = vrot.slane %v128_v33, %v167_v45  ;;  %v175_v60 = vrot.slane %v128_v33, %v174_v50  ;;  %v182_v61 = vrot.slane %v128_v33, %v181_v54  ;;  %v565_v32 = vld [vmem:[%s1287_s8] sm:$0xf] }
  0x12   :  { %923 = vmatmul.mubr.msk.f32.vlgmr.msra.gmra.mrb[2].mxu0 %vm282_vm5, %v275_v8  ;;  %924 = vmatprep.subr.msk.mxu0 %vm51_vm1, %v281_v10 }
  0x13   :  { %429 = vmatprep.mubr.f32.mxu0 %v1070_v4  ;;  %925 = vmatpush1.msk.msra.mxu0 %vm51_vm1, %v277_v9 }
  0x14   :  { %994 = vmatprep.subr.mxu0 %v1070_v4 }
  0x16   :  { %926 = vmatmul.mubr.msk.f32.vlgmr.msra.gmra.mrb[4].mxu0 %vm282_vm5, %v275_v8 }
  0x17   :  { %996 = vmatprep.mubr.msk.f32.mxu0 %vm1069_vm0, %v1070_v4 }
  0x82   :  { %v45_v12 = vpop.permute.xlu0 %44 }
  0xe0   :  { %v121_v13 = vpop.f32.mrb[0].mxu0 }
  0xe1   :  { %v122_v14 = vadd.f32 %v121_v13, %v45_v12  ;;  %v972_v15 = vpop.f32.mrb[1].mxu0 }
  0xe3   :  { %vm125_vm3 = vcmp.ge.f32.partialorder %v122_v14, 0.0  ;;  %v126_v16 = vmul.f32 0.1, %v122_v14 }
  0xe5   :  { %v1161_v17 = vsel %vm125_vm3, %v122_v14, %v126_v16  ;;  %v360_v37 = vpop.f32.mrb[2].mxu0 }
  0xe6   :  { %137 = vrot.lane.b32.xlu1 %v1161_v17, %s1072_s0  ;;  %130 = vrot.lane.b32.xlu0 %v1161_v17, %s1073_s4  ;;  %v162_v58 = vmul.f32 %v161_v49, %v1161_v17 }
  0xea   :  { %144 = vrot.lane.b32.xlu1 %v1161_v17, %s1074_s3  ;;  %151 = vrot.lane.b32.xlu0 %v1161_v17, %s1075_s27 }
  0xee   :  { %163 = vrot.lane.b32.xlu1 %v1161_v17, %s1076_s30  ;;  %170 = vrot.lane.b32.xlu0 %v1161_v17, %s1077_s11 }
  0xf2   :  { %177 = vrot.lane.b32.xlu1 %v1161_v17, %s1078_s12  ;;  %184 = vrot.lane.b32.xlu0 %v1161_v17, %s1079_s13 }
  0xf6   :  { %439 = vperm.xlu0 %1048, %v436_v19   ;;  %557 = vperm.xlu1 %1049, %v554_v23  }
  0xfa   :  { %677 = vperm.xlu0 %1048, %v674_v20   ;;  %795 = vperm.xlu1 %1049, %v792_v24  }
  0xfe   :  { %647 = vperm.xlu0 %1048, %v644_v21   ;;  %527 = vperm.xlu1 %1049, %v524_v25  }
 0x102   :  { %885 = vperm.xlu0 %1048, %v882_v22   ;;  %765 = vperm.xlu1 %1049, %v762_v27   ;;  %v446_v27 = vld [vmem:[%s1287_s8] sm:$0xf] }
 0x158   :  { %v138_v38 = vpop.permute.xlu1 %137  ;;  %v131_v39 = vpop.permute.xlu0 %130 }
 0x159   :  { %v143_v42 = vmul.f32 %v142_v35, %v138_v38  ;;  %v136_v43 = vmul.f32 %v135_v36, %v131_v39  ;;  %v684_v35 = vld [vmem:[%s1287_s8] sm:$0xf]  ;;  %v362_v38 = vpop.f32.mrb[3].mxu0 }
 0x15a   :  { %v803_v36 = vld [vmem:[%s1287_s8] sm:$0xf]  ;;  %v431_v39 = vpop.f32.mrb[4].mxu0 }
 0x15b   :  { %v1020_v46 = vpack.c.bf16 %v143_v42, %v136_v43 }
 0x15c   :  { %v145_v47 = vpop.permute.xlu1 %144  ;;  %v152_v48 = vpop.permute.xlu0 %151 }
 0x15d   :  { %v150_v51 = vmul.f32 %v149_v40, %v145_v47  ;;  %v157_v52 = vmul.f32 %v156_v44, %v152_v48  ;;  %1021 = vmatprep.subr.bf16.mxu1 %v1020_v46  ;;  %v433_v40 = vpop.f32.mrb[5].mxu0 }
 0x15e   :  { %1023 = vmatpush3.bf16.msra.mxu1 %v1020_v46 }
 0x15f   :  { %v1024_v55 = vpack.c.bf16 %v157_v52, %v150_v51 }
 0x160   :  { %v164_v56 = vpop.permute.xlu1 %163  ;;  %v171_v57 = vpop.permute.xlu0 %170 }
 0x161   :  { %v169_v59 = vmul.f32 %v168_v53, %v164_v56  ;;  %1025 = vmatprep.subr.bf16.mxu1 %v1024_v55  ;;  %v176_v0 = vmul.f32 %v175_v60, %v171_v57 }
 0x162   :  { %1027 = vmatpush3.bf16.msra.mxu1 %v1024_v55 }
 0x163   :  { %v1028_v62 = vpack.c.bf16 %v169_v59, %v162_v58 }
 0x164   :  { %v178_v63 = vpop.permute.xlu1 %177  ;;  %v185_v3 = vpop.permute.xlu0 %184 }
 0x165   :  { %v183_v1 = vmul.f32 %v182_v61, %v178_v63  ;;  %1029 = vmatprep.subr.bf16.mxu1 %v1028_v62  ;;  %v190_v6 = vmul.f32 %v918_v2, %v185_v3 }
 0x166   :  { %1031 = vmatpush3.bf16.msra.mxu1 %v1028_v62 }
 0x167   :  { %v1032_v5 = vpack.c.bf16 %v183_v1, %v176_v0 }
 0x169   :  { %1033 = vmatprep.subr.bf16.mxu1 %v1032_v5 }
 0x16a   :  { %1035 = vmatpush3.bf16.msra.mxu1 %v1032_v5 }
 0x16b   :  { %989 = vmatprep.subr.mxu1 %v190_v6 }
 0x16e   :  { %990 = vmatpush3.msra.mxu1 %v190_v6 }
 0x16f   :  { %992 = vmatmul.mubr.msk.f32.vlgmr.msra.gmra.mrb[0].mxu1 %vm193_vm4, %v192_v7  ;;  %999 = vmatprep.subr.mxu1 %v1070_v4 }
 0x170   :  { %1001 = vmatprep.mubr.msk.f32.mxu1 %vm1069_vm0, %v1070_v4 }
 0x175   :  { %v558_v11 = vpop.permute.xlu1 %557  ;;  %v440_v12 = vpop.permute.xlu0 %439 }
 0x176   :  { %v559_v15 = vrot.slane %v558_v11, 4 }
 0x179   :  { %v796_v13 = vpop.permute.xlu1 %795  ;;  %v678_v16 = vpop.permute.xlu0 %677 }
 0x17a   :  { %v797_v14 = vrot.slane %v796_v13, 4 }
 0x17d   :  { %v528_v41 = vpop.permute.xlu1 %527  ;;  %v648_v45 = vpop.permute.xlu0 %647 }
 0x181   :  { %v766_v54 = vpop.permute.xlu1 %765  ;;  %v886_v61 = vpop.permute.xlu0 %885 }
 0x242   :  { %v993_v17 = vpop.f32.mrb[0].mxu1 }
 0x243   :  { %v680_v18 = vadd.f32 %v993_v17, %v678_v16  ;;  %v799_v19 = vadd.f32 %v993_v17, %v797_v14  ;;  %v266_v20 = vpop.f32.mrb[1].mxu1 }
 0x244   :  { %v442_v21 = vadd.f32 %v440_v12, %v266_v20  ;;  %v561_v22 = vadd.f32 %v559_v15, %v266_v20 }
 0x245   :  { %v682_v23 = vmul.f32 0.1, %v680_v18  ;;  %vm800_vm6 = vcmp.ge.f32.partialorder %v799_v19, 0.0  ;;  %v801_v24 = vmul.f32 0.1, %v799_v19  ;;  %vm681_vm9 = vcmp.ge.f32.partialorder %v680_v18, 0.0 }
 0x246   :  { %vm443_vm7 = vcmp.ge.f32.partialorder %v442_v21, 0.0  ;;  %v444_v25 = vmul.f32 0.1, %v442_v21  ;;  %vm562_vm8 = vcmp.ge.f32.partialorder %v561_v22, 0.0  ;;  %v563_v26 = vmul.f32 0.1, %v561_v22 }
 0x247   :  { %v802_v28 = vsel %vm800_vm6, %v799_v19, %v801_v24  ;;  %v683_v33 = vsel %vm681_vm9, %v680_v18, %v682_v23 }
 0x248   :  { %v564_v29 = vsel %vm562_vm8, %v561_v22, %v563_v26  ;;  %v445_v30 = vsel %vm443_vm7, %v442_v21, %v444_v25  ;;  %v805_v34 = vrot.slane %v802_v28, 4 }
 0x249   :  { %v567_v31 = vrot.slane %v564_v29, 4  ;;  %995 = vmatpush3.msk.msra.mxu0 %vm51_vm1, %v445_v30 }
 0x24a   :  { %997 = vmatmul.mubr.msk.f32.vlgmr.msra.gmra.mrb[6].mxu0 %vm282_vm5, %v446_v27  ;;  %1004 = vmatprep.subr.mxu0 %v1070_v4 }
 0x24b   :  { %1000 = vmatpush3.msk.msra.mxu1 %vm51_vm1, %v567_v31  ;;  %1005 = vmatpush3.msk.msra.mxu0 %vm51_vm1, %v683_v33 }
 0x24c   :  { %1002 = vmatmul.mubr.msk.f32.vlgmr.msra.gmra.mrb[2].mxu1 %vm282_vm5, %v565_v32  ;;  %1009 = vmatprep.subr.mxu1 %v1070_v4 }
 0x24d   :  { %1006 = vmatprep.mubr.msk.f32.mxu0 %vm1069_vm0, %v1070_v4  ;;  %1010 = vmatpush3.msk.msra.mxu1 %vm51_vm1, %v805_v34 }
 0x24e   :  { %1007 = vmatmul.mubr.msk.f32.vlgmr.msra.gmra.mrb[8].mxu0 %vm282_vm5, %v684_v35  ;;  %1011 = vmatprep.mubr.msk.f32.mxu1 %vm1069_vm0, %v1070_v4 }
 0x250   :  { %1012 = vmatmul.mubr.msk.f32.vlgmr.msra.gmra.mrb[4].mxu1 %vm282_vm5, %v803_v36 }
 0x31d   :  { %v519_v42 = vpop.f32.mrb[6].mxu0 }
 0x31e   :  { %v523_v43 = vadd.f32 %v519_v42, %v360_v37  ;;  %v998_v44 = vpop.f32.mrb[7].mxu0 }
 0x31f   :  { %v639_v46 = vpop.f32.mrb[2].mxu1 }
 0x320   :  { %v530_v47 = vadd.f32 %v528_v41, %v523_v43  ;;  %v643_v48 = vadd.f32 %v639_v46, %v362_v38  ;;  %v1003_v49 = vpop.f32.mrb[3].mxu1 }
 0x321   :  { %v757_v50 = vpop.f32.mrb[8].mxu0 }
 0x322   :  { %v531_v51 = vsel %vm51_vm1, %v530_v47, -inf  ;;  %v650_v52 = vadd.f32 %v648_v45, %v643_v48  ;;  %v761_v4 = vadd.f32 %v757_v50, %v431_v39  ;;  %v1008_v53 = vpop.f32.mrb[9].mxu0 }
 0x323   :  { %v532_v55 = vrot.slane %v531_v51, 4  ;;  %v877_v56 = vpop.f32.mrb[4].mxu1 }
 0x324   :  { %v651_v57 = vsel %vm51_vm1, %v650_v52, -inf  ;;  %v768_v58 = vadd.f32 %v766_v54, %v761_v4  ;;  %v881_v59 = vadd.f32 %v877_v56, %v433_v40  ;;  %v1013_v60 = vpop.f32.mrb[5].mxu1 }
 0x325   :  { %v533_v62 = vmax.f32 %v531_v51, %v532_v55  ;;  %v652_v63 = vrot.slane %v651_v57, 4 }
 0x326   :  { %v769_v0 = vsel %vm51_vm1, %v768_v58, -inf  ;;  %v888_v1 = vadd.f32 %v886_v61, %v881_v59 }
 0x327   :  { %v534_v2 = vrot.slane %v533_v62, 2  ;;  %v653_v3 = vmax.f32 %v651_v57, %v652_v63  ;;  %v770_v5 = vrot.slane %v769_v0, 4 }
 0x328   :  { %v889_v6 = vsel %vm51_vm1, %v888_v1, -inf }
 0x329   :  { %v535_v7 = vmax.f32 %v533_v62, %v534_v2  ;;  %v654_v8 = vrot.slane %v653_v3, 2  ;;  %v771_v9 = vmax.f32 %v769_v0, %v770_v5  ;;  %v890_v10 = vrot.slane %v889_v6, 4 }
 0x32b   :  { %v536_v11 = vrot.slane %v535_v7, 1  ;;  %v655_v12 = vmax.f32 %v653_v3, %v654_v8  ;;  %v772_v13 = vrot.slane %v771_v9, 2  ;;  %v891_v14 = vmax.f32 %v889_v6, %v890_v10 }
 0x32d   :  { %v537_v15 = vmax.f32 %v535_v7, %v536_v11  ;;  %v656_v16 = vrot.slane %v655_v12, 1  ;;  %v773_v17 = vmax.f32 %v771_v9, %v772_v13  ;;  %v892_v18 = vrot.slane %v891_v14, 2 }
 0x32f   :  { %v538_v19 = vsub.f32 %v530_v47, %v537_v15  ;;  %v657_v20 = vmax.f32 %v655_v12, %v656_v16  ;;  %v774_v21 = vrot.slane %v773_v17, 1  ;;  %v893_v22 = vmax.f32 %v891_v14, %v892_v18 }
 0x331   :  { %v539_v23 = vmul.f32 1.442695, %v538_v19  ;;  %v658_v24 = vsub.f32 %v650_v52, %v657_v20  ;;  %v775_v25 = vmax.f32 %v773_v17, %v774_v21  ;;  %v894_v26 = vrot.slane %v893_v22, 1 }
 0x333   :  { %1052 = vpow2.f32 %v539_v23  ;;  %v659_v27 = vmul.f32 1.442695, %v658_v24  ;;  %v776_v28 = vsub.f32 %v768_v58, %v775_v25  ;;  %v895_v29 = vmax.f32 %v893_v22, %v894_v26 }
 0x335   :  { %1054 = vpow2.f32 %v659_v27  ;;  %v777_v30 = vmul.f32 1.442695, %v776_v28  ;;  %v896_v31 = vsub.f32 %v888_v1, %v895_v29 }
 0x337   :  { %1056 = vpow2.f32 %v777_v30  ;;  %v897_v32 = vmul.f32 1.442695, %v896_v31 }
 0x339   :  { %1058 = vpow2.f32 %v897_v32 }
 0x33d   :  { %v1053_v33 = vpop.eup %1052 }
 0x33e   :  { %v541_v34 = vsel %vm51_vm1, %v1053_v33, 0.0 }
 0x33f   :  { %v1055_v35 = vpop.eup %1054  ;;  %v542_v36 = vrot.slane %v541_v34, 4 }
 0x340   :  { %v661_v37 = vsel %vm51_vm1, %v1055_v35, 0.0 }
 0x341   :  { %v1057_v38 = vpop.eup %1056  ;;  %v543_v39 = vadd.f32 %v542_v36, %v541_v34  ;;  %v662_v40 = vrot.slane %v661_v37, 4 }
 0x342   :  { %v779_v41 = vsel %vm51_vm1, %v1057_v38, 0.0 }
 0x343   :  { %v1059_v42 = vpop.eup %1058  ;;  %v544_v43 = vrot.slane %v543_v39, 2  ;;  %v663_v44 = vadd.f32 %v662_v40, %v661_v37  ;;  %v780_v45 = vrot.slane %v779_v41, 4 }
 0x344   :  { %v899_v46 = vsel %vm51_vm1, %v1059_v42, 0.0 }
 0x345   :  { %v545_v47 = vadd.f32 %v544_v43, %v543_v39  ;;  %v664_v48 = vrot.slane %v663_v44, 2  ;;  %v781_v49 = vadd.f32 %v780_v45, %v779_v41  ;;  %v900_v50 = vrot.slane %v899_v46, 4 }
 0x347   :  { %v546_v51 = vrot.slane %v545_v47, 1  ;;  %v665_v52 = vadd.f32 %v664_v48, %v663_v44  ;;  %v782_v4 = vrot.slane %v781_v49, 2  ;;  %v901_v53 = vadd.f32 %v900_v50, %v899_v46 }
 0x349   :  { %v547_v54 = vadd.f32 %v546_v51, %v545_v47  ;;  %v666_v55 = vrot.slane %v665_v52, 1  ;;  %v783_v56 = vadd.f32 %v782_v4, %v781_v49  ;;  %v902_v57 = vrot.slane %v901_v53, 2 }
 0x34b   :  { %1060 = vrcp.f32 %v547_v54  ;;  %v667_v58 = vadd.f32 %v666_v55, %v665_v52  ;;  %v784_v59 = vrot.slane %v783_v56, 1  ;;  %v903_v60 = vadd.f32 %v902_v57, %v901_v53 }
 0x34d   :  { %1062 = vrcp.f32 %v667_v58  ;;  %v785_v61 = vadd.f32 %v784_v59, %v783_v56  ;;  %v904_v62 = vrot.slane %v903_v60, 1 }
 0x34f   :  { %1064 = vrcp.f32 %v785_v61  ;;  %v905_v63 = vadd.f32 %v904_v62, %v903_v60 }
 0x351   :  { %1066 = vrcp.f32 %v905_v63 }
 0x355   :  { %v1061_v0 = vpop.eup %1060 }
 0x356   :  { %v549_v1 = vmul.f32 %v1061_v0, %v547_v54 }
 0x357   :  { %v1063_v2 = vpop.eup %1062 }
 0x358   :  { %v550_v3 = vsub.f32 2.0, %v549_v1  ;;  %v669_v5 = vmul.f32 %v1063_v2, %v667_v58 }
 0x359   :  { %v1065_v6 = vpop.eup %1064 }
 0x35a   :  { %v551_v7 = vmul.f32 %v1061_v0, %v550_v3  ;;  %v670_v8 = vsub.f32 2.0, %v669_v5  ;;  %v787_v9 = vmul.f32 %v1065_v6, %v785_v61 }
 0x35b   :  { %v1067_v10 = vpop.eup %1066 }
 0x35c   :  { %v552_v11 = vmul.f32 %v1053_v33, %v551_v7  ;;  %v671_v12 = vmul.f32 %v1063_v2, %v670_v8  ;;  %v788_v13 = vsub.f32 2.0, %v787_v9  ;;  %v907_v14 = vmul.f32 %v1067_v10, %v905_v63 }
 0x35e   :  { %553 = vst [vmem:[%s1288_s10] sm:$0xf] %v552_v11  ;;  %v672_v15 = vmul.f32 %v1055_v35, %v671_v12  ;;  %v789_v16 = vmul.f32 %v1065_v6, %v788_v13  ;;  %v908_v17 = vsub.f32 2.0, %v907_v14 }
 0x360   :  { %673 = vst [vmem:[%s1288_s10 + $0x4] sm:$0xf] %v672_v15  ;;  %v790_v18 = vmul.f32 %v1057_v38, %v789_v16  ;;  %v909_v19 = vmul.f32 %v1067_v10, %v908_v17 }
 0x362   :  { %791 = vst [vmem:[%s1288_s10 + $0x8] sm:$0xf] %v790_v18  ;;  %v910_v20 = vmul.f32 %v1059_v42, %v909_v19 }
 0x364   :  { %911 = vst [vmem:[%s1288_s10 + $0xc] sm:$0xf] %v910_v20 }

</bundles_post_ra>
